<compile_context>
chip_gen: v7x
topology: tpu7x:2x2x1
jax: 0.10.0
libtpu: 0.0.40
codegen_flags: <defaults>
</compile_context>

<pallas_src>
import jax
import jax.numpy as jnp
from jax import lax
from jax.experimental import pallas as pl
from jax.experimental.pallas import tpu as pltpu

BN_EPS = 1e-5
LANE = 128


def _round_up(x, m):
    return (x + m - 1) // m * m


# --------------------------------------------------------------------------
# Kernel A: conv (single im2col matmul) + bias + per-channel sum / sumsq
# accumulation (masked to the valid rows) across the M-tile grid axis.
# --------------------------------------------------------------------------
def make_conv_stats_kernel(m_valid, tile_m):
    def kernel(patches_ref, w_ref, b_ref, y_ref, stats_ref):
        i = pl.program_id(0)

        # One lane-dense MXU matmul: (tile_m, Kp) x (Kp, Cp) -> f32 acc.
        acc = jnp.dot(patches_ref[...], w_ref[...],
                      preferred_element_type=jnp.float32)
        acc = acc + b_ref[...]                       # conv bias (hoisted (1,Cp))
        y_ref[...] = acc                             # pre-BN conv output

        # Mask out padded rows (rows >= m_valid) so BN stats stay global/exact.
        row = i * tile_m + lax.broadcasted_iota(jnp.int32, (tile_m, 1), 0)
        valid = (row < m_valid).astype(jnp.float32)  # (tile_m, 1)
        accv = acc * valid

        cp = accv.shape[1]
        s = jnp.sum(accv, axis=0, keepdims=True)          # (1, Cp) sum
        ss = jnp.sum(accv * acc, axis=0, keepdims=True)   # (1, Cp) sum of squares
        upd = jnp.concatenate(
            [s, ss, jnp.zeros((6, cp), jnp.float32)], axis=0)  # (8, Cp)

        @pl.when(i == 0)
        def _():
            stats_ref[...] = jnp.zeros_like(stats_ref)

        stats_ref[...] += upd   # resident accumulator across the grid axis

    return kernel


# --------------------------------------------------------------------------
# Kernel B: elementwise BN affine + ReLU (second sweep, 'parallel' axis).
# --------------------------------------------------------------------------
def bn_relu_kernel(y_ref, scale_ref, shift_ref, o_ref):
    o_ref[...] = jnp.maximum(y_ref[...] * scale_ref[...] + shift_ref[...], 0.0)


# --------------------------------------------------------------------------
# One Conv2d(3x3, pad=1) + BatchNorm2d(train) + ReLU stage.
# --------------------------------------------------------------------------
def conv_bn_relu_stage(x_nhwc, w_hwio, bias, gamma, beta, *, tile_m=256):
    N, H, W, Cin = x_nhwc.shape
    Cout = w_hwio.shape[-1]
    M = N * H * W
    K = 9 * Cin
    Kp = _round_up(K, LANE)          # lane-dense contraction dim
    Cp = _round_up(Cout, LANE)       # lane-dense channel dim
    Mp = _round_up(M, tile_m)
    n_tiles = Mp // tile_m

    # ---- wrapper-side layout glue (HBM): zero-pad + im2col tap gather ----
    xp = jnp.pad(x_nhwc, ((0, 0), (1, 1), (1, 1), (0, 0)))
    taps = [xp[:, dy:dy + H, dx:dx + W, :] for dy in range(3) for dx in range(3)]
    patches = jnp.concatenate(taps, axis=-1).reshape(M, K)      # (M, 9*Cin)
    patches = jnp.pad(patches, ((0, Mp - M), (0, Kp - K)))

    # Prepacked lane-dense weight (9*Cin_pad, Cout_pad) matching tap order.
    w_packed = jnp.pad(w_hwio.reshape(K, Cout), ((0, Kp - K), (0, Cp - Cout)))
    b_p = jnp.pad(bias.reshape(1, Cout), ((0, 0), (0, Cp - Cout)))
    g_p = jnp.pad(gamma.reshape(1, Cout), ((0, 0), (0, Cp - Cout)))
    be_p = jnp.pad(beta.reshape(1, Cout), ((0, 0), (0, Cp - Cout)))

    cparams_red = pltpu.CompilerParams(
        dimension_semantics=("arbitrary",),
        vmem_limit_bytes=32 * 1024 * 1024)
    cparams_par = pltpu.CompilerParams(
        dimension_semantics=("parallel",),
        vmem_limit_bytes=32 * 1024 * 1024)

    # ---- call A: conv + bias, accumulate per-channel sum / sumsq ----
    y_pre, stats = pl.pallas_call(
        make_conv_stats_kernel(M, tile_m),
        grid=(n_tiles,),
        in_specs=[
            pl.BlockSpec((tile_m, Kp), lambda i: (i, 0)),
            pl.BlockSpec((Kp, Cp), lambda i: (0, 0)),
            pl.BlockSpec((1, Cp), lambda i: (0, 0)),
        ],
        out_specs=(
            pl.BlockSpec((tile_m, Cp), lambda i: (i, 0)),
            pl.BlockSpec((8, Cp), lambda i: (0, 0)),
        ),
        out_shape=(
            jax.ShapeDtypeStruct((Mp, Cp), jnp.float32),
            jax.ShapeDtypeStruct((8, Cp), jnp.float32),
        ),
        compiler_params=cparams_red,
    )(patches, w_packed, b_p)

    # ---- finalize BN stats (tiny per-channel math on (1, Cp) vectors) ----
    mean = stats[0:1] / M
    var = stats[1:2] / M - mean * mean          # biased var (training mode)
    rstd = lax.rsqrt(var + BN_EPS)
    scale = g_p * rstd
    shift = be_p - mean * scale

    # ---- call B: normalize + ReLU, elementwise, 'parallel' sweep ----
    y = pl.pallas_call(
        bn_relu_kernel,
        grid=(n_tiles,),
        in_specs=[
            pl.BlockSpec((tile_m, Cp), lambda i: (i, 0)),
            pl.BlockSpec((1, Cp), lambda i: (0, 0)),
            pl.BlockSpec((1, Cp), lambda i: (0, 0)),
        ],
        out_specs=pl.BlockSpec((tile_m, Cp), lambda i: (i, 0)),
        out_shape=jax.ShapeDtypeStruct((Mp, Cp), jnp.float32),
        compiler_params=cparams_par,
    )(y_pre, scale, shift)

    return y[:M, :Cout].reshape(N, H, W, Cout)


# --------------------------------------------------------------------------
# Full conv_block forward: two Conv+BN+ReLU stages (NCHW in / NCHW out).
# --------------------------------------------------------------------------
def conv_block_forward(x_nchw, params):
    x = jnp.transpose(x_nchw, (0, 2, 3, 1))      # NCHW -> NHWC (lane = channels)
    x = conv_bn_relu_stage(x, params["w1"], params["b1"],
                           params["g1"], params["be1"])
    x = conv_bn_relu_stage(x, params["w2"], params["b2"],
                           params["g2"], params["be2"])
    return jnp.transpose(x, (0, 3, 1, 2))        # back to NCHW


# --------------------------------------------------------------------------
# Pure-JAX reference (matches PyTorch training-mode forward).
# --------------------------------------------------------------------------
def conv_block_reference(x_nchw, params):
    def stage(x, w, b, g, be):
        y = lax.conv_general_dilated(
            x, w, window_strides=(1, 1), padding="SAME",
            dimension_numbers=("NHWC", "HWIO", "NHWC"))
        y = y + b
        mean = jnp.mean(y, axis=(0, 1, 2), keepdims=True)
        var = jnp.mean((y - mean) ** 2, axis=(0, 1, 2), keepdims=True)
        y = (y - mean) * lax.rsqrt(var + BN_EPS)
        y = y * g + be
        return jnp.maximum(y, 0.0)

    x = jnp.transpose(x_nchw, (0, 2, 3, 1))
    x = stage(x, params["w1"], params["b1"], params["g1"], params["be1"])
    x = stage(x, params["w2"], params["b2"], params["g2"], params["be2"])
    return jnp.transpose(x, (0, 3, 1, 2))


if __name__ == "__main__":
    N, Cin, Cout, H, W = 2, 4, 8, 16, 16

    key = jax.random.PRNGKey(0)
    k1, k2, k3, k4, k5, k6, k7, k8, kx = jax.random.split(key, 9)

    params = {
        # Conv2d(in_ch=4, out_ch=8, k=3) in HWIO layout + bias.
        "w1": jax.random.normal(k1, (3, 3, Cin, Cout), jnp.float32) * 0.1,
        "b1": jax.random.normal(k2, (Cout,), jnp.float32) * 0.1,
        "g1": 1.0 + 0.1 * jax.random.normal(k3, (Cout,), jnp.float32),
        "be1": 0.1 * jax.random.normal(k4, (Cout,), jnp.float32),
        # Conv2d(in_ch=8, out_ch=8, k=3) + bias.
        "w2": jax.random.normal(k5, (3, 3, Cout, Cout), jnp.float32) * 0.1,
        "b2": jax.random.normal(k6, (Cout,), jnp.float32) * 0.1,
        "g2": 1.0 + 0.1 * jax.random.normal(k7, (Cout,), jnp.float32),
        "be2": 0.1 * jax.random.normal(k8, (Cout,), jnp.float32),
    }

    x = jax.random.normal(kx, (N, Cin, H, W), dtype=jnp.float32)

    out = jax.block_until_ready(conv_block_forward(x, params))
    ref = jax.block_until_ready(conv_block_reference(x, params))

    assert out.shape == (N, Cout, H, W), out.shape
    max_err = float(jnp.max(jnp.abs(out - ref)))
    assert jnp.allclose(out, ref, atol=1e-4, rtol=1e-4), max_err

    print("KERNEL_OK")
</pallas_src>

<mosaic_0001>
module attributes {stable_mosaic.version = 11 : i64} {
  func.func @kernel(%arg0: i32, %arg1: memref<256x128xf32, #tpu.memory_space<vmem>>, %arg2: memref<128x128xf32, #tpu.memory_space<vmem>>, %arg3: memref<1x128xf32, #tpu.memory_space<vmem>>, %arg4: memref<256x128xf32, #tpu.memory_space<vmem>>, %arg5: memref<8x128xf32, #tpu.memory_space<vmem>>) attributes {dimension_semantics = [#tpu.dimension_semantics<arbitrary>], iteration_bounds = array<i64: 2>, scalar_prefetch = 0 : i64, scratch_operands = 0 : i64, tpu.core_type = #tpu.core_type<tc>, window_params = [{transform_indices = @transform_0, window_bounds = array<i64: 256, 128>}, {pipeline_mode = #tpu.pipeline_mode<synchronous>, transform_indices = @transform_1, window_bounds = array<i64: 128, 128>}, {pipeline_mode = #tpu.pipeline_mode<synchronous>, transform_indices = @transform_2, window_bounds = array<i64: 1, 128>}, {transform_indices = @transform_3, window_bounds = array<i64: 256, 128>}, {pipeline_mode = #tpu.pipeline_mode<synchronous>, transform_indices = @transform_4, window_bounds = array<i64: 8, 128>}]} {
    %c0 = arith.constant 0 : index
    %c0_0 = arith.constant 0 : index
    %0 = vector.load %arg1[%c0, %c0_0] : memref<256x128xf32, #tpu.memory_space<vmem>>, vector<256x128xf32>
    %c0_1 = arith.constant 0 : index
    %c0_2 = arith.constant 0 : index
    %1 = vector.load %arg2[%c0_1, %c0_2] : memref<128x128xf32, #tpu.memory_space<vmem>>, vector<128x128xf32>
    %cst = arith.constant dense<0.000000e+00> : vector<256x128xf32>
    %2 = tpu.matmul %0, %1, %cst {dimension_numbers = #tpu.dot_dimension_numbers<[1], [0], [0], [1], [0, 0, 1, 1], [], []>} : vector<256x128xf32>, vector<128x128xf32>, vector<256x128xf32> -> vector<256x128xf32>
    %c0_3 = arith.constant 0 : index
    %c0_4 = arith.constant 0 : index
    %3 = vector.load %arg3[%c0_3, %c0_4] : memref<1x128xf32, #tpu.memory_space<vmem>>, vector<1x128xf32>
    %4 = vector.broadcast %3 : vector<1x128xf32> to vector<256x128xf32>
    %5 = arith.addf %2, %4 : vector<256x128xf32>
    %c0_5 = arith.constant 0 : index
    %c0_6 = arith.constant 0 : index
    %6 = vector.load %arg4[%c0_5, %c0_6] : memref<256x128xf32, #tpu.memory_space<vmem>>, vector<256x128xf32>
    tpu.vector_store %arg4[%c0_5, %c0_6], %5 {strides = array<i32>} : memref<256x128xf32, #tpu.memory_space<vmem>>, vector<256x128xf32>,
    %c256_i32 = arith.constant 256 : i32
    %7 = arith.muli %arg0, %c256_i32 : i32
    %8 = tpu.iota {dimensions = array<i32: 0>} : vector<256x1xi32>
    %9 = vector.broadcast %7 : i32 to vector<256x1xi32>
    %10 = arith.addi %9, %8 : vector<256x1xi32>
    %c512_i32 = arith.constant 512 : i32
    %11 = vector.broadcast %c512_i32 : i32 to vector<256x1xi32>
    %12 = arith.cmpi slt, %10, %11 : vector<256x1xi32>
    %13 = arith.extui %12 : vector<256x1xi1> to vector<256x1xi32>
    %14 = arith.sitofp %13 : vector<256x1xi32> to vector<256x1xf32>
    %15 = vector.broadcast %14 : vector<256x1xf32> to vector<256x128xf32>
    %16 = arith.mulf %5, %15 : vector<256x128xf32>
    %cst_7 = arith.constant dense<0.000000e+00> : vector<128xf32>
    %17 = vector.multi_reduction <add>, %16, %cst_7 [0] : vector<256x128xf32> to vector<128xf32>
    %18 = vector.shape_cast %17 : vector<128xf32> to vector<1x128xf32>
    %19 = arith.mulf %16, %5 : vector<256x128xf32>
    %cst_8 = arith.constant dense<0.000000e+00> : vector<128xf32>
    %20 = vector.multi_reduction <add>, %19, %cst_8 [0] : vector<256x128xf32> to vector<128xf32>
    %21 = vector.shape_cast %20 : vector<128xf32> to vector<1x128xf32>
    %cst_9 = arith.constant 0.000000e+00 : f32
    %22 = vector.broadcast %cst_9 : f32 to vector<6x128xf32>
    %23 = tpu.concatenate %18, %21, %22 in 0 : vector<1x128xf32>, vector<1x128xf32>, vector<6x128xf32> -> vector<8x128xf32>
    %c0_i32 = arith.constant 0 : i32
    %24 = arith.cmpi eq, %arg0, %c0_i32 : i32
    %25 = arith.extui %24 : i1 to i32
    %c0_i32_10 = arith.constant 0 : i32
    %26 = arith.cmpi ne, %25, %c0_i32_10 : i32
    scf.if %26 {
      %cst_15 = arith.constant 0.000000e+00 : f32
      %30 = vector.broadcast %cst_15 : f32 to vector<8x128xf32>
      %c0_16 = arith.constant 0 : index
      %c0_17 = arith.constant 0 : index
      %31 = vector.load %arg5[%c0_16, %c0_17] : memref<8x128xf32, #tpu.memory_space<vmem>>, vector<8x128xf32>
      tpu.vector_store %arg5[%c0_16, %c0_17], %30 {strides = array<i32>} : memref<8x128xf32, #tpu.memory_space<vmem>>, vector<8x128xf32>,
    } else {
    }
    %c0_11 = arith.constant 0 : index
    %c0_12 = arith.constant 0 : index
    %27 = vector.load %arg5[%c0_11, %c0_12] : memref<8x128xf32, #tpu.memory_space<vmem>>, vector<8x128xf32>
    %28 = arith.addf %27, %23 : vector<8x128xf32>
    %c0_13 = arith.constant 0 : index
    %c0_14 = arith.constant 0 : index
    %29 = vector.load %arg5[%c0_13, %c0_14] : memref<8x128xf32, #tpu.memory_space<vmem>>, vector<8x128xf32>
    tpu.vector_store %arg5[%c0_13, %c0_14], %28 {strides = array<i32>} : memref<8x128xf32, #tpu.memory_space<vmem>>, vector<8x128xf32>,
    return
  }
  func.func @transform_0(%arg0: i32) -> (i32, i32) {
    %c0_i32 = arith.constant 0 : i32
    %c0_i32_0 = arith.constant 0 : i32
    return %arg0, %c0_i32 : i32, i32
  }
  func.func @transform_1(%arg0: i32) -> (i32, i32) {
    %c0_i32 = arith.constant 0 : i32
    %c0_i32_0 = arith.constant 0 : i32
    %c0_i32_1 = arith.constant 0 : i32
    return %c0_i32, %c0_i32_0 : i32, i32
  }
  func.func @transform_2(%arg0: i32) -> (i32, i32) {
    %c0_i32 = arith.constant 0 : i32
    %c0_i32_0 = arith.constant 0 : i32
    %c0_i32_1 = arith.constant 0 : i32
    return %c0_i32, %c0_i32_0 : i32, i32
  }
  func.func @transform_3(%arg0: i32) -> (i32, i32) {
    %c0_i32 = arith.constant 0 : i32
    %c0_i32_0 = arith.constant 0 : i32
    return %arg0, %c0_i32 : i32, i32
  }
  func.func @transform_4(%arg0: i32) -> (i32, i32) {
    %c0_i32 = arith.constant 0 : i32
    %c0_i32_0 = arith.constant 0 : i32
    %c0_i32_1 = arith.constant 0 : i32
    return %c0_i32, %c0_i32_0 : i32, i32
  }
}

</mosaic_0001>

<bundles_post_ra>
// kernel: tpu_custom_call.1
= control target key start
LH: loop header
LB: loop body
LE: loop exit
PB: predicated region body
PF: predicated region fallthrough
CT: control target
= control target key end

     0   :  { %10 = vsyncpa [#allocation3], 0  ;;  %s2045_s0 = inlined_call_operand.hbm [shape: f32[512,128], index: 0, kind: input, shape index: {}]   ;;  %s2046_s1 = inlined_call_operand.hbm [shape: f32[128,128], index: 1, kind: input, shape index: {}]   ;;  %s2047_s2 = inlined_call_operand.vmem [shape: f32[1,128], index: 2, kind: input, shape index: {}]   ;;  %s2048_s3 = inlined_call_operand.hbm [shape: f32[512,128], index: 3, kind: output, shape index: {0}]   ;;  %s2049_s4 = inlined_call_operand.hbm [shape: f32[8,128], index: 4, kind: output, shape index: {1}]  }
   0x1   :  { %12 = vsyncpa [#allocation3 + $0x1], 0 }
   0x2   :  { %13 = vsyncpa [#allocation6], 0 }
   0x3   :  { %14 = vsyncpa [#allocation4], 0 }
   0x4   :  { %16 = vsyncpa [#allocation4 + $0x1], 0 }
   0x5   :  { %17 = vsyncpa [#allocation9], 0  ;;  %s1472_s15 = smov 0   ;;  %s1474_s16 = smov 0  }
   0x6   :  { %s1476_s17 = smov 0   ;;  %s1478_s18 = smov 0  }
   0x7 LB: > { %s1493_s19 = sadd.s32 4294967295, %s1435_s18   ;;  %s976_s20 = sadd.s32 4294967294, %s1435_s18   ;;  %s1435_s18 = sphi %s1478_s18, %s2075_s18   ;;  %s1431_s17 = sphi %s1476_s17, %s2074_s17   ;;  %s1427_s16 = sphi %s1474_s16, %s2073_s16   ;;  %s1423_s15 = sphi %s1472_s15, %s2072_s15  }
   0x8   : > { %p43_p0 = scmp.ne.s32.totalorder %s1427_s16, %s1423_s15  ;;  %p2050_p1 = scmp.eq.s32.totalorder %s1493_s19, 0 }
   0x9   : > { %p115_p3 = scmp.eq.s32.totalorder %s976_s20, 1  ;;  %p977_p5 = scmp.ge.s32.totalorder %s1435_s18, 1 }
   0xa   : > { %p1502_p4 = por %p2050_p1, %p43_p0  ;;  %p143_p7 = scmp.lt.s32.totalorder %s1435_s18, 3 }
   0xb   : > { %p1507_p6 = por %p115_p3, %p43_p0  ;;  %s1437_s24 = smov [#allocation5]  }
   0xc   : > { %s2053_s21 = scalar_select %p1502_p4, 1, 0 }
   0xd   : > { %s2054_s22 = scalar_select %p1507_p6, 1, 0 }
   0xe   : > { %p1513_p9 = pnand %p977_p5, %p143_p7  ;;  %s155_s25 = sshll.u32 %s1437_s24, 4  ;;  %s1517_s25 = int_to_ptr.vmem [resolvable:$true] %s155_s25 }
   0xf   : > { %s1529_s27 = sadd.s32 1, %s1435_s18   ;;  %s30_s28 = sadd.s32 1, %s1431_s17 }
  0x10   : > { %s2055_s23 = scalar_select %p1513_p9, 1, 0 }
  0x11   : > { %p1219_p10 = pneg %p1513_p9  ;;  %s27_s29 = ssub.s32 %s1435_s18, %s1529_s27 }
  0x12   : > { %s1277_s6 = scalar_lea.hbm %s2046_s1, 2048 }
  0x13   : > { %p1524_p12 = pnand %p1219_p10, %p2050_p1  ;;  %p1278_p13 = scmp.ne.s32.totalorder %s2046_s1, %s1277_s6 }
  0x14   : > { %p1284_p7 = scmp.lt.u32.totalorder %s1277_s6, %s2046_s1 }
  0x15   : > { %p1279_p0 = pneg %p1524_p12 }
  0x17   : > { %p1280_p3 = pnand %p1279_p0, %p1278_p13 }
  0x19   : > { %p1281_p5 = pneg %p1280_p3 }
  0x1b   : > { %p1286_p10 = pnand %p1284_p7, %p1281_p5 }
  0x1d   : > { %1289 = shalt.err (!%p1286_p10)
}
  0x1e   : > { %s1290_s11 = scalar_lea.vmem %s1517_s25, 2048  ;;  %p1298_p2 = scmp.lt.s32.totalorder %s1517_s25, %s1517_s25 }
  0x1f   : > { %p1291_p11 = scmp.ne.s32.totalorder %s1517_s25, %s1290_s11  ;;  %p1299_p6 = scmp.lt.s32.totalorder %s1290_s11, %s1290_s11 }
  0x21   : > { %p1293_p8 = pnand %p1291_p11, %p1279_p0  ;;  %p1300_p4 = por %p1299_p6, %p1298_p2 }
  0x23   : > { %p1294_p1 = pneg %p1293_p8 }
  0x25   : > { %p1301_p9 = pnand %p1300_p4, %p1294_p1 }
  0x27   : > { %1304 = shalt.err (!%p1301_p9)
}
  0x28   : > { %s1438_s12 = smov 128   ;;  %s1439_s13 = smov 8  }
  0x29   : > { %1222 = dma.hbm_to_vmem [thread:$0]  (!%p1524_p12), %s2046_s1, 2048, %s1517_s25, [#allocation6], %s1438_s12, %s1438_s12, %s1439_s13  }
  0x2a   : > { %p28_p1 = scmp.eq.s32.totalorder %s27_s29, 0  ;;  %p37_p2 = scmp.ne.s32.totalorder %s1431_s17, %s1427_s16 }
  0x2b   : > { %p38_p4 = scmp.eq.s32.totalorder %s1435_s18, 0  ;;  %p1232_p6 = scmp.lt.s32.totalorder %s1435_s18, 2 }
  0x2c   : > { %s1563_s24 = scalar_select %p28_p1, %s1431_s17, %s30_s28  }
  0x2d   : > { %p39_p8 = por %p38_p4, %p37_p2  ;;  %p2057_p9 = scmp.eq.s32.totalorder %s1493_s19, 1 }
  0x2e   : > { %s172_s26 = sand.u32 1, %s1431_s17   ;;  %s1029_s5 = sshll.u32 %s1435_s18, 12 }
  0x2f   : > { %p1567_p11 = por %p2057_p9, %p37_p2  ;;  %s980_s6 = sshll.u32 %s172_s26, 8 }
  0x30   : > { %s1576_s9 = scalar_lea.hbm %s2045_s0, %s1029_s5  ;;  %s176_s25 = scalar_lea.vmem [#allocation2], %s980_s6 }
  0x31   : > { %s183_s28 = sshll.u32 %s176_s25, 4  ;;  %p1578_p12 = pnand %p1232_p6, %p39_p8  ;;  %s1582_s28 = int_to_ptr.vmem [resolvable:$true] %s183_s28 }
  0x32   : > { %s1584_s10 = scalar_lea.sflag [#allocation3], %s172_s26  ;;  %s1305_s11 = scalar_lea.hbm %s1576_s9, 4096 }
  0x33   : > { %p1306_p13 = scmp.ne.s32.totalorder %s1576_s9, %s1305_s11  ;;  %p1307_p0 = pneg %p1578_p12 }
  0x34   : > { %s1310_s5 = scalar_lea.hbm %s2045_s0, 8192  ;;  %p1311_p7 = scmp.lt.u32.totalorder %s1576_s9, %s2045_s0 }
  0x35   : > { %p1308_p3 = pnand %p1307_p0, %p1306_p13  ;;  %p1312_p10 = scmp.lt.u32.totalorder %s1310_s5, %s1305_s11 }
  0x36   : > { %p1314_p2 = scmp.lt.u32.totalorder %s1305_s11, %s1576_s9 }
  0x37   : > { %p1309_p5 = pneg %p1308_p3  ;;  %p1313_p1 = por %p1312_p10, %p1311_p7 }
  0x39   : > { %p1315_p4 = por %p1314_p2, %p1313_p1 }
  0x3b   : > { %p1316_p6 = pnand %p1315_p4, %p1309_p5 }
  0x3d   : > { %1319 = shalt.err (!%p1316_p6)
}
  0x3e   : > { %s1320_s26 = scalar_lea.vmem %s1582_s28, 4096  ;;  %s1440_s8 = smov [#allocation2]  }
  0x3f   : > { %p1321_p8 = scmp.ne.s32.totalorder %s1582_s28, %s1320_s26  ;;  %s1325_s25 = sshll.u32 %s1440_s8, 4  ;;  %s1326_s25 = int_to_ptr.vmem [resolvable:$false] %s1325_s25 }
  0x40   : > { %s1327_s14 = scalar_lea.vmem %s1326_s25, 8192  ;;  %p1328_p3 = scmp.lt.s32.totalorder %s1582_s28, %s1326_s25 }
  0x41   : > { %p1323_p9 = pnand %p1321_p8, %p1307_p0  ;;  %p1329_p7 = scmp.lt.s32.totalorder %s1327_s14, %s1320_s26 }
  0x43   : > { %p1324_p13 = pneg %p1323_p9  ;;  %p1330_p10 = por %p1329_p7, %p1328_p3 }
  0x45   : > { %p1331_p1 = pnand %p1330_p10, %p1324_p13 }
  0x47   : > { %1334 = shalt.err (!%p1331_p1)
}
  0x48   : > { %1226 = dma.hbm_to_vmem [thread:$0]  (!%p1578_p12), %s1576_s9, 4096, %s1582_s28, %s1584_s10, %s1438_s12, %s1438_s12, %s1439_s13  }
  0x49   : > { %p2060_p0 = scmp.ne.s32.totalorder %s2055_s23, 0 }
  0x4a   : > { %s1618_s11 = sand.u32 (!%p2060_p0), 1, %s1427_s16   ;;  %p2061_p5 = scmp.ne.s32.totalorder (!%p2060_p0), %s2053_s21, 0 }
  0x4b   : > { %195 = sbr.rel (%p2060_p0) target bundleno = 471 (0x1d7), region = 32  ;;  %s984_s20 = sshll.u32 (!%p2060_p0), %s1618_s11, 8 }
  0x4c   : > { %s198_s5 = scalar_lea.sflag (!%p2060_p0), [#allocation3], %s1618_s11  ;;  %s1624_s29 = scalar_lea.vmem (!%p2060_p0), [#allocation2], %s984_s20 }
  0x52   : > { %1406 = dma.done.wait (%p2061_p5), %s198_s5, 4096  }
  0x53   : > { %1408 = vsyncadd (%p2061_p5), %s198_s5, 4294963200  ;;  %p2062_p12 = scmp.eq.s32.totalorder %s1493_s19, 0 }
  0x55   : > { %1410 = dma.done.wait (%p2062_p12), [#allocation6], 2048   ;;  %p2063_p2 = pmov %p2062_p12 }
  0x56   : > { %v264_v0 = vld [vmem:[#allocation5] sm:$0xff]  ;;  %v265_v1 = vld [vmem:[#allocation5 + $0x8] sm:$0xff]  ;;  %v266_v2 = vld [vmem:[#allocation5 + $0x10] sm:$0xff]  ;;  %v545_v56 = vlaneseq  ;;  %s988_s21 = sshll.u32 %s1493_s19, 8  ;;  %s1720_s13 = scalar_lea.vmem [#allocation7], %s984_s20 }
  0x57   : > { %1412 = vsyncadd (%p2063_p2), [#allocation6], 4294965248  ;;  %v1159_v3 = vpack.c.bf16 %v265_v1, %v264_v0  ;;  %v267_v4 = vld [vmem:[#allocation5 + $0x18] sm:$0xff]  ;;  %v268_v6 = vld [vmem:[#allocation5 + $0x20] sm:$0xff]  ;;  %v1670_v59 = vstv %s988_s21  ;;  %p2064_p4 = scmp.ne.s32.totalorder %s1493_s19, 0 }
  0x58   : > { %v1163_v5 = vpack.c.bf16 %v267_v4, %v266_v2  ;;  %v269_v7 = vld [vmem:[#allocation5 + $0x28] sm:$0xff]  ;;  %v232_v9 = vld [vmem:[%s1624_s29] sm:$0xff]  ;;  %v270_v10 = vld [vmem:[#allocation5 + $0x30] sm:$0xff]  ;;  %v1666_v57 = vshrl.u32 %v545_v56, 7 }
  0x59   : > { %1160 = vmatprep.subr.bf16.mxu0 %v1159_v3  ;;  %1191 = vmatprep.subr.bf16.mxu1 %v1159_v3  ;;  %v1167_v8 = vpack.c.bf16 %v269_v7, %v268_v6  ;;  %v271_v11 = vld [vmem:[#allocation5 + $0x38] sm:$0xff]  ;;  %v272_v13 = vld [vmem:[#allocation5 + $0x40] sm:$0xff]  ;;  %v273_v14 = vld [vmem:[#allocation5 + $0x48] sm:$0xff] }
  0x5a   : > { %1162 = vmatpush3.bf16.msra.mxu0 %v1159_v3  ;;  %1199 = vmatpush3.bf16.msra.mxu1 %v1159_v3  ;;  %v1171_v12 = vpack.c.bf16 %v271_v11, %v270_v10  ;;  %v248_v15 = vld [vmem:[%s1624_s29 + $0x80] sm:$0xff]  ;;  %v1175_v16 = vpack.c.bf16 %v273_v14, %v272_v13  ;;  %v274_v17 = vld [vmem:[#allocation5 + $0x50] sm:$0xff]  ;;  %v275_v18 = vld [vmem:[#allocation5 + $0x58] sm:$0xff]  ;;  %v547_v58 = vadd.s32 8, %v1666_v57  ;;  %v549_v60 = vadd.s32 24, %v1666_v57 }
  0x5b   : > { %1164 = vmatprep.subr.bf16.mxu0 %v1163_v5  ;;  %1192 = vmatprep.subr.bf16.mxu1 %v1163_v5  ;;  %v1179_v19 = vpack.c.bf16 %v275_v18, %v274_v17  ;;  %v276_v20 = vld [vmem:[#allocation5 + $0x60] sm:$0xff]  ;;  %v277_v21 = vld [vmem:[#allocation5 + $0x68] sm:$0xff]  ;;  %v278_v23 = vld [vmem:[#allocation5 + $0x70] sm:$0xff]  ;;  %v548_v61 = vadd.s32 16, %v1666_v57  ;;  %v579_v63 = vadd.s32 %v1670_v59, %v1666_v57  ;;  %v551_v1 = vadd.s32 40, %v1666_v57 }
  0x5c   : > { %1111 = vmatprep.mubr.f32.mxu0 %v232_v9  ;;  %1135 = vmatprep.mubr.f32.mxu1 %v248_v15  ;;  %v1183_v22 = vpack.c.bf16 %v277_v21, %v276_v20  ;;  %v279_v24 = vld [vmem:[#allocation5 + $0x78] sm:$0xff]  ;;  %v233_v26 = vld [vmem:[%s1624_s29 + $0x8] sm:$0xff]  ;;  %v234_v28 = vld [vmem:[%s1624_s29 + $0x10] sm:$0xff]  ;;  %v580_v62 = vadd.s32 %v1670_v59, %v547_v58  ;;  %v582_v0 = vadd.s32 %v1670_v59, %v549_v60  ;;  %v550_v3 = vadd.s32 32, %v1666_v57 }
  0x5d   : > { %v1187_v25 = vpack.c.bf16 %v279_v24, %v278_v23  ;;  %v249_v27 = vld [vmem:[%s1624_s29 + $0x88] sm:$0xff]  ;;  %v250_v29 = vld [vmem:[%s1624_s29 + $0x90] sm:$0xff]  ;;  %v235_v30 = vld [vmem:[%s1624_s29 + $0x18] sm:$0xff]  ;;  %v581_v2 = vadd.s32 %v1670_v59, %v548_v61  ;;  %v553_v4 = vadd.s32 56, %v1666_v57  ;;  %v555_v6 = vadd.s32 72, %v1666_v57 }
  0x5e   : > { %1166 = vmatpush3.bf16.msra.mxu0 %v1163_v5  ;;  %1200 = vmatpush3.bf16.msra.mxu1 %v1163_v5  ;;  %v251_v31 = vld [vmem:[%s1624_s29 + $0x98] sm:$0xff]  ;;  %v236_v32 = vld [vmem:[%s1624_s29 + $0x20] sm:$0xff]  ;;  %v237_v34 = vld [vmem:[%s1624_s29 + $0x28] sm:$0xff]  ;;  %v552_v5 = vadd.s32 48, %v1666_v57  ;;  %vm612_vm0 = vcmp.lt.s32.totalorder %v580_v62, 512  ;;  %vm611_vm1 = vcmp.lt.s32.totalorder %v579_v63, 512  ;;  %v584_v7 = vadd.s32 %v1670_v59, %v551_v1 }
  0x5f   : > { %1168 = vmatprep.subr.bf16.mxu0 %v1167_v8  ;;  %1193 = vmatprep.subr.bf16.mxu1 %v1167_v8  ;;  %v252_v33 = vld [vmem:[%s1624_s29 + $0xa0] sm:$0xff]  ;;  %v253_v35 = vld [vmem:[%s1624_s29 + $0xa8] sm:$0xff]  ;;  %v238_v36 = vld [vmem:[%s1624_s29 + $0x30] sm:$0xff]  ;;  %vm614_vm2 = vcmp.lt.s32.totalorder %v582_v0, 512  ;;  %vm613_vm3 = vcmp.lt.s32.totalorder %v581_v2, 512  ;;  %v586_v9 = vadd.s32 %v1670_v59, %v553_v4  ;;  %v588_v11 = vadd.s32 %v1670_v59, %v555_v6 }
  0x60   : > { %v254_v37 = vld [vmem:[%s1624_s29 + $0xb0] sm:$0xff]  ;;  %v239_v38 = vld [vmem:[%s1624_s29 + $0x38] sm:$0xff]  ;;  %v240_v40 = vld [vmem:[%s1624_s29 + $0x40] sm:$0xff]  ;;  %v585_v10 = vadd.s32 %v1670_v59, %v552_v5  ;;  %v557_v13 = vadd.s32 88, %v1666_v57  ;;  %v556_v14 = vadd.s32 80, %v1666_v57  ;;  %v1441_v15 = vmov 0.0  }
  0x61   : > { %v255_v39 = vld [vmem:[%s1624_s29 + $0xb8] sm:$0xff]  ;;  %v256_v41 = vld [vmem:[%s1624_s29 + $0xc0] sm:$0xff]  ;;  %v241_v42 = vld [vmem:[%s1624_s29 + $0x48] sm:$0xff]  ;;  %v989_v18 = vsel %vm611_vm1, 1.0, %v1441_v15  ;;  %vm616_vm4 = vcmp.lt.s32.totalorder %v584_v7, 512  ;;  %v559_v20 = vadd.s32 104, %v1666_v57 }
  0x62   : > { %1170 = vmatpush3.bf16.msra.mxu0 %v1167_v8  ;;  %1201 = vmatpush3.bf16.msra.mxu1 %v1167_v8  ;;  %v257_v43 = vld [vmem:[%s1624_s29 + $0xc8] sm:$0xff]  ;;  %v242_v44 = vld [vmem:[%s1624_s29 + $0x50] sm:$0xff]  ;;  %v243_v46 = vld [vmem:[%s1624_s29 + $0x58] sm:$0xff]  ;;  %v583_v8 = vadd.s32 %v1670_v59, %v550_v3  ;;  %v991_v21 = vsel %vm613_vm3, 1.0, %v1441_v15  ;;  %vm618_vm6 = vcmp.lt.s32.totalorder %v586_v9, 512  ;;  %vm617_vm7 = vcmp.lt.s32.totalorder %v585_v10, 512 }
  0x63   : > { %1172 = vmatprep.subr.bf16.mxu0 %v1171_v12  ;;  %1194 = vmatprep.subr.bf16.mxu1 %v1171_v12  ;;  %v258_v45 = vld [vmem:[%s1624_s29 + $0xd0] sm:$0xff]  ;;  %v259_v47 = vld [vmem:[%s1624_s29 + $0xd8] sm:$0xff]  ;;  %v244_v48 = vld [vmem:[%s1624_s29 + $0x60] sm:$0xff]  ;;  %vm620_vm8 = vcmp.lt.s32.totalorder %v588_v11, 512  ;;  %v590_v24 = vadd.s32 %v1670_v59, %v557_v13  ;;  %v560_v4 = vadd.s32 112, %v1666_v57 }
  0x64   : > { %v260_v49 = vld [vmem:[%s1624_s29 + $0xe0] sm:$0xff]  ;;  %v245_v50 = vld [vmem:[%s1624_s29 + $0x68] sm:$0xff]  ;;  %v246_v52 = vld [vmem:[%s1624_s29 + $0x70] sm:$0xff]  ;;  %vm615_vm5 = vcmp.lt.s32.totalorder %v583_v8, 512 }
  0x65   : > { %v261_v51 = vld [vmem:[%s1624_s29 + $0xe8] sm:$0xff]  ;;  %v262_v53 = vld [vmem:[%s1624_s29 + $0xf0] sm:$0xff]  ;;  %v247_v54 = vld [vmem:[%s1624_s29 + $0x78] sm:$0xff]  ;;  %vm622_vm10 = vcmp.lt.s32.totalorder %v590_v24, 512  ;;  %v593_v24 = vadd.s32 %v1670_v59, %v560_v4 }
  0x66   : > { %1174 = vmatpush3.bf16.msra.mxu0 %v1171_v12  ;;  %1202 = vmatpush3.bf16.msra.mxu1 %v1171_v12  ;;  %v263_v55 = vld [vmem:[%s1624_s29 + $0xf8] sm:$0xff]  ;;  %v554_v12 = vadd.s32 64, %v1666_v57  ;;  %v1696_v17 = vld [vmem:[%s2047_s2] ss:$0 sm:$0xff] }
  0x67   : > { %1176 = vmatprep.subr.bf16.mxu0 %v1175_v16  ;;  %1195 = vmatprep.subr.bf16.mxu1 %v1175_v16  ;;  %vm625_vm15 = vcmp.lt.s32.totalorder %v593_v24, 512 }
  0x68   : > { %v587_v23 = vadd.s32 %v1670_v59, %v554_v12  ;;  %v563_v12 = vadd.s32 136, %v1666_v57 }
  0x6a   : > { %1178 = vmatpush3.bf16.msra.mxu0 %v1175_v16  ;;  %1203 = vmatpush3.bf16.msra.mxu1 %v1175_v16  ;;  %v990_v16 = vsel %vm612_vm0, 1.0, %v1441_v15  ;;  %vm619_vm9 = vcmp.lt.s32.totalorder %v587_v23, 512 }
  0x6b   : > { %1180 = vmatprep.subr.bf16.mxu0 %v1179_v19  ;;  %1196 = vmatprep.subr.bf16.mxu1 %v1179_v19 }
  0x6e   : > { %1182 = vmatpush3.bf16.msra.mxu0 %v1179_v19  ;;  %1204 = vmatpush3.bf16.msra.mxu1 %v1179_v19  ;;  %v992_v19 = vsel %vm614_vm2, 1.0, %v1441_v15 }
  0x6f   : > { %1184 = vmatprep.subr.bf16.mxu0 %v1183_v22  ;;  %1197 = vmatprep.subr.bf16.mxu1 %v1183_v22 }
  0x72   : > { %1186 = vmatpush3.bf16.msra.mxu0 %v1183_v22  ;;  %1205 = vmatpush3.bf16.msra.mxu1 %v1183_v22 }
  0x73   : > { %1188 = vmatprep.subr.bf16.mxu0 %v1187_v25  ;;  %1198 = vmatprep.subr.bf16.mxu1 %v1187_v25 }
  0x76   : > { %1190 = vmatpush3.bf16.msra.mxu0 %v1187_v25  ;;  %1206 = vmatpush3.bf16.msra.mxu1 %v1187_v25  ;;  %v589_v25 = vadd.s32 %v1670_v59, %v556_v14 }
  0x78   : > { %vm621_vm11 = vcmp.lt.s32.totalorder %v589_v25, 512  ;;  %v562_v25 = vadd.s32 128, %v1666_v57 }
  0x79   : > { %1112 = vmatmul.mubr.f32.vlgmr.msra.gmra.mrb[0].mxu0 %v233_v26  ;;  %1136 = vmatmul.mubr.f32.vlgmr.msra.gmra.mrb[0].mxu1 %v249_v27  ;;  %v1766_v63 = vsel %vm621_vm11, 1.0, %v1441_v15 }
  0x7a   : > { %1114 = vmatprep.mubr.f32.mxu0 %v234_v28  ;;  %1138 = vmatprep.mubr.f32.mxu1 %v250_v29  ;;  %v994_v29 = vsel %vm616_vm4, 1.0, %v1441_v15 }
  0x7d   : > { %1115 = vmatmul.mubr.f32.gmra.mrb[2].mxu0 %v235_v30  ;;  %1139 = vmatmul.mubr.f32.gmra.mrb[2].mxu1 %v251_v31  ;;  %v558_v30 = vadd.s32 96, %v1666_v57 }
  0x7e   : > { %1117 = vmatprep.mubr.f32.mxu0 %v236_v32  ;;  %1141 = vmatprep.mubr.f32.mxu1 %v252_v33 }
  0x81   : > { %1118 = vmatmul.mubr.f32.gmra.mrb[4].mxu0 %v237_v34  ;;  %1142 = vmatmul.mubr.f32.gmra.mrb[4].mxu1 %v253_v35  ;;  %v993_v34 = vsel %vm615_vm5, 1.0, %v1441_v15  ;;  %v592_v35 = vadd.s32 %v1670_v59, %v559_v20 }
  0x82   : > { %1120 = vmatprep.mubr.f32.mxu0 %v238_v36  ;;  %1144 = vmatprep.mubr.f32.mxu1 %v254_v37 }
  0x83   : > { %vm624_vm12 = vcmp.lt.s32.totalorder %v592_v35, 512  ;;  %v1802_v35 = vadd.s32 %v1670_v59, %v563_v12 }
  0x84   : > { %v1771_v3 = vsel %vm624_vm12, 1.0, %v1441_v15 }
  0x85   : > { %1121 = vmatmul.mubr.f32.gmra.mrb[6].mxu0 %v239_v38  ;;  %1145 = vmatmul.mubr.f32.gmra.mrb[6].mxu1 %v255_v39  ;;  %v1725_v38 = vsel %vm618_vm6, 1.0, %v1441_v15  ;;  %v1729_v39 = vsel %vm617_vm7, 1.0, %v1441_v15  ;;  %vm628_vm1 = vcmp.lt.s32.totalorder %v1802_v35, 512 }
  0x86   : > { %1123 = vmatprep.mubr.f32.mxu0 %v240_v40  ;;  %1147 = vmatprep.mubr.f32.mxu1 %v256_v41  ;;  %v1733_v40 = vsel %vm620_vm8, 1.0, %v1441_v15 }
  0x89   : > { %1124 = vmatmul.mubr.f32.gmra.mrb[8].mxu0 %v241_v42  ;;  %1148 = vmatmul.mubr.f32.gmra.mrb[8].mxu1 %v257_v43 }
  0x8a   : > { %1126 = vmatprep.mubr.f32.mxu0 %v242_v44  ;;  %1150 = vmatprep.mubr.f32.mxu1 %v258_v45 }
  0x8d   : > { %1127 = vmatmul.mubr.f32.gmra.mrb[10].mxu0 %v243_v46  ;;  %1151 = vmatmul.mubr.f32.gmra.mrb[10].mxu1 %v259_v47  ;;  %v1742_v47 = vadd.s32 %v1670_v59, %v558_v30 }
  0x8e   : > { %1129 = vmatprep.mubr.f32.mxu0 %v244_v48  ;;  %1153 = vmatprep.mubr.f32.mxu1 %v260_v49 }
  0x8f   : > { %vm623_vm13 = vcmp.lt.s32.totalorder %v1742_v47, 512 }
  0x91   : > { %1130 = vmatmul.mubr.f32.gmra.mrb[12].mxu0 %v245_v50  ;;  %1154 = vmatmul.mubr.f32.gmra.mrb[12].mxu1 %v261_v51 }
  0x92   : > { %1132 = vmatprep.mubr.f32.mxu0 %v246_v52  ;;  %1156 = vmatprep.mubr.f32.mxu1 %v262_v53  ;;  %v1751_v53 = vsel %vm619_vm9, 1.0, %v1441_v15 }
  0x95   : > { %1133 = vmatmul.mubr.f32.gmra.mrb[14].mxu0 %v247_v54  ;;  %1157 = vmatmul.mubr.f32.gmra.mrb[14].mxu1 %v263_v55  ;;  %v1755_v54 = vsel %vm622_vm10, 1.0, %v1441_v15  ;;  %v561_v55 = vadd.s32 120, %v1666_v57 }
  0x97   : > { %v594_v11 = vadd.s32 %v1670_v59, %v561_v55 }
  0x99   : > { %vm626_vm14 = vcmp.lt.s32.totalorder %v594_v11, 512  ;;  %v564_v11 = vadd.s32 144, %v1666_v57 }
 0x14c   : > { %v1113_v22 = vpop.f32.mrb[0].mxu0  ;;  %v1137_v26 = vpop.f32.mrb[0].mxu1 }
 0x14d   : > { %v359_v27 = vadd.f32 %v1113_v22, %v1696_v17  ;;  %v353_v28 = vpop.f32.mrb[1].mxu0  ;;  %v1709_v31 = vadd.f32 %v1137_v26, %v1696_v17  ;;  %v433_v32 = vpop.f32.mrb[1].mxu1 }
 0x14e   : > { %v354_v33 = vadd.f32 %v1696_v17, %v353_v28  ;;  %v1716_v36 = vadd.f32 %v1696_v17, %v433_v32 }
 0x14f   : > { %513 = vst [vmem:[%s1720_s13 + $0x8] sm:$0xff] %v359_v27  ;;  %v708_v37 = vmul.f32 %v990_v16, %v359_v27  ;;  %529 = vst [vmem:[%s1720_s13 + $0x88] sm:$0xff] %v1709_v31 }
 0x150   : > { %512 = vst [vmem:[%s1720_s13] sm:$0xff] %v354_v33  ;;  %v707_v41 = vmul.f32 %v989_v18, %v354_v33  ;;  %v1116_v42 = vpop.f32.mrb[2].mxu0  ;;  %528 = vst [vmem:[%s1720_s13 + $0x80] sm:$0xff] %v1716_v36  ;;  %v1140_v43 = vpop.f32.mrb[2].mxu1 }
 0x151   : > { %v777_v44 = vmul.f32 %v708_v37, %v359_v27  ;;  %v369_v45 = vadd.f32 %v1116_v42, %v1696_v17  ;;  %v363_v46 = vpop.f32.mrb[3].mxu0  ;;  %v1745_v48 = vadd.f32 %v1140_v43, %v1696_v17  ;;  %v443_v49 = vpop.f32.mrb[3].mxu1 }
 0x152   : > { %v739_v50 = vadd.f32 %v708_v37, %v707_v41  ;;  %v776_v51 = vmul.f32 %v707_v41, %v354_v33  ;;  %v364_v52 = vadd.f32 %v1696_v17, %v363_v46  ;;  %v1761_v56 = vadd.f32 %v1696_v17, %v443_v49 }
 0x153   : > { %515 = vst [vmem:[%s1720_s13 + $0x18] sm:$0xff] %v369_v45  ;;  %531 = vst [vmem:[%s1720_s13 + $0x98] sm:$0xff] %v1745_v48  ;;  %v710_v60 = vmul.f32 %v992_v19, %v369_v45  ;;  %v595_v49 = vadd.s32 %v1670_v59, %v562_v25 }
 0x154   : > { %v808_v58 = vadd.f32 %v777_v44, %v776_v51  ;;  %514 = vst [vmem:[%s1720_s13 + $0x10] sm:$0xff] %v364_v52  ;;  %v709_v61 = vmul.f32 %v991_v21, %v364_v52  ;;  %v1119_v62 = vpop.f32.mrb[4].mxu0  ;;  %v1143_v0 = vpop.f32.mrb[4].mxu1  ;;  %530 = vst [vmem:[%s1720_s13 + $0x90] sm:$0xff] %v1761_v56 }
 0x155   : > { %v379_v1 = vadd.f32 %v1119_v62, %v1696_v17  ;;  %v373_v2 = vpop.f32.mrb[5].mxu0  ;;  %v453_v5 = vpop.f32.mrb[5].mxu1  ;;  %v1779_v9 = vadd.f32 %v1143_v0, %v1696_v17  ;;  %v779_v14 = vmul.f32 %v710_v60, %v369_v45  ;;  %v1825_v62 = vsel %vm626_vm14, 1.0, %v1441_v15 }
 0x156   : > { %v740_v6 = vadd.f32 %v739_v50, %v709_v61  ;;  %v778_v7 = vmul.f32 %v709_v61, %v364_v52  ;;  %v374_v8 = vadd.f32 %v1696_v17, %v373_v2  ;;  %v1785_v13 = vadd.f32 %v1696_v17, %v453_v5 }
 0x157   : > { %517 = vst [vmem:[%s1720_s13 + $0x28] sm:$0xff] %v379_v1  ;;  %v712_v10 = vmul.f32 %v994_v29, %v379_v1  ;;  %533 = vst [vmem:[%s1720_s13 + $0xa8] sm:$0xff] %v1779_v9  ;;  %v1001_v61 = vsel %vm623_vm13, 1.0, %v1441_v15  ;;  %vm627_vm0 = vcmp.lt.s32.totalorder %v595_v49, 512 }
 0x158   : > { %v809_v16 = vadd.f32 %v808_v58, %v778_v7  ;;  %516 = vst [vmem:[%s1720_s13 + $0x20] sm:$0xff] %v374_v8  ;;  %v711_v18 = vmul.f32 %v993_v34, %v374_v8  ;;  %v741_v19 = vadd.f32 %v740_v6, %v710_v60  ;;  %v1122_v20 = vpop.f32.mrb[6].mxu0  ;;  %v1146_v21 = vpop.f32.mrb[6].mxu1  ;;  %532 = vst [vmem:[%s1720_s13 + $0xa0] sm:$0xff] %v1785_v13 }
 0x159   : > { %v389_v22 = vadd.f32 %v1122_v20, %v1696_v17  ;;  %v383_v23 = vpop.f32.mrb[7].mxu0  ;;  %v1796_v26 = vadd.f32 %v1146_v21, %v1696_v17  ;;  %v463_v27 = vpop.f32.mrb[7].mxu1  ;;  %v781_v33 = vmul.f32 %v712_v10, %v379_v1 }
 0x15a   : > { %v742_v28 = vadd.f32 %v741_v19, %v711_v18  ;;  %v780_v29 = vmul.f32 %v711_v18, %v374_v8  ;;  %v810_v30 = vadd.f32 %v809_v16, %v779_v14  ;;  %v384_v32 = vadd.f32 %v1696_v17, %v383_v23 }
 0x15b   : > { %519 = vst [vmem:[%s1720_s13 + $0x38] sm:$0xff] %v389_v22  ;;  %v714_v34 = vmul.f32 %v1725_v38, %v389_v22  ;;  %535 = vst [vmem:[%s1720_s13 + $0xb8] sm:$0xff] %v1796_v26  ;;  %v1809_v44 = vadd.f32 %v1696_v17, %v463_v27  ;;  %v565_v19 = vadd.s32 152, %v1666_v57 }
 0x15c   : > { %v811_v37 = vadd.f32 %v810_v30, %v780_v29  ;;  %518 = vst [vmem:[%s1720_s13 + $0x30] sm:$0xff] %v384_v32  ;;  %v713_v41 = vmul.f32 %v1729_v39, %v384_v32  ;;  %v743_v42 = vadd.f32 %v742_v28, %v712_v10  ;;  %v1125_v43 = vpop.f32.mrb[8].mxu0  ;;  %v1149_v45 = vpop.f32.mrb[8].mxu1  ;;  %v1838_v10 = vsel %vm625_vm15, 1.0, %v1441_v15 }
 0x15d   : > { %v399_v38 = vadd.f32 %v1125_v43, %v1696_v17  ;;  %v393_v46 = vpop.f32.mrb[9].mxu0  ;;  %v1814_v50 = vadd.f32 %v1149_v45, %v1696_v17  ;;  %v473_v51 = vpop.f32.mrb[9].mxu1  ;;  %534 = vst [vmem:[%s1720_s13 + $0xb0] sm:$0xff] %v1809_v44  ;;  %v783_v60 = vmul.f32 %v714_v34, %v389_v22  ;;  %v1005_v30 = vsel %vm627_vm0, 1.0, %v1441_v15 }
 0x15e   : > { %v744_v39 = vadd.f32 %v743_v42, %v713_v41  ;;  %v782_v52 = vmul.f32 %v713_v41, %v384_v32  ;;  %v812_v55 = vadd.f32 %v811_v37, %v781_v33  ;;  %v394_v58 = vadd.f32 %v1696_v17, %v393_v46 }
 0x15f   : > { %521 = vst [vmem:[%s1720_s13 + $0x48] sm:$0xff] %v399_v38  ;;  %537 = vst [vmem:[%s1720_s13 + $0xc8] sm:$0xff] %v1814_v50  ;;  %v1830_v0 = vadd.f32 %v1696_v17, %v473_v51  ;;  %v716_v2 = vmul.f32 %v1733_v40, %v399_v38  ;;  %v597_v32 = vadd.s32 %v1670_v59, %v564_v11  ;;  %v566_v33 = vadd.s32 160, %v1666_v57 }
 0x160   : > { %v813_v1 = vadd.f32 %v812_v55, %v782_v52  ;;  %520 = vst [vmem:[%s1720_s13 + $0x40] sm:$0xff] %v394_v58  ;;  %v715_v4 = vmul.f32 %v1751_v53, %v394_v58  ;;  %v745_v5 = vadd.f32 %v744_v39, %v714_v34  ;;  %v1128_v47 = vpop.f32.mrb[10].mxu0  ;;  %v1152_v6 = vpop.f32.mrb[10].mxu1  ;;  %v568_v11 = vadd.s32 176, %v1666_v57 }
 0x161   : > { %v409_v7 = vadd.f32 %v1128_v47, %v1696_v17  ;;  %v403_v8 = vpop.f32.mrb[11].mxu0  ;;  %536 = vst [vmem:[%s1720_s13 + $0xc0] sm:$0xff] %v1830_v0  ;;  %v483_v40 = vpop.f32.mrb[11].mxu1  ;;  %v1849_v20 = vadd.f32 %v1152_v6, %v1696_v17  ;;  %v785_v22 = vmul.f32 %v716_v2, %v399_v38  ;;  %v598_v38 = vadd.s32 %v1670_v59, %v565_v19 }
 0x162   : > { %v746_v12 = vadd.f32 %v745_v5, %v715_v4  ;;  %v784_v53 = vmul.f32 %v715_v4, %v394_v58  ;;  %v814_v14 = vadd.f32 %v813_v1, %v783_v60  ;;  %v404_v16 = vadd.f32 %v1696_v17, %v403_v8 }
 0x163   : > { %523 = vst [vmem:[%s1720_s13 + $0x58] sm:$0xff] %v409_v7  ;;  %v718_v18 = vmul.f32 %v1755_v54, %v409_v7  ;;  %v1852_v21 = vadd.f32 %v1696_v17, %v483_v40  ;;  %539 = vst [vmem:[%s1720_s13 + $0xd8] sm:$0xff] %v1849_v20  ;;  %vm629_vm2 = vcmp.lt.s32.totalorder %v597_v32, 512  ;;  %vm630_vm3 = vcmp.lt.s32.totalorder %v598_v38, 512 }
 0x164   : > { %v815_v23 = vadd.f32 %v814_v14, %v784_v53  ;;  %522 = vst [vmem:[%s1720_s13 + $0x50] sm:$0xff] %v404_v16  ;;  %v717_v24 = vmul.f32 %v1766_v63, %v404_v16  ;;  %v747_v25 = vadd.f32 %v746_v12, %v716_v2  ;;  %v1131_v27 = vpop.f32.mrb[12].mxu0  ;;  %v1155_v28 = vpop.f32.mrb[12].mxu1  ;;  %v599_v2 = vadd.s32 %v1670_v59, %v566_v33 }
 0x165   : > { %v419_v54 = vadd.f32 %v1131_v27, %v1696_v17  ;;  %v413_v29 = vpop.f32.mrb[13].mxu0  ;;  %538 = vst [vmem:[%s1720_s13 + $0xd0] sm:$0xff] %v1852_v21  ;;  %v493_v63 = vpop.f32.mrb[13].mxu1  ;;  %v787_v43 = vmul.f32 %v718_v18, %v409_v7  ;;  %v1870_v46 = vadd.f32 %v1155_v28, %v1696_v17  ;;  %v569_v19 = vadd.s32 184, %v1666_v57 }
 0x166   : > { %v748_v34 = vadd.f32 %v747_v25, %v717_v24  ;;  %v786_v37 = vmul.f32 %v717_v24, %v404_v16  ;;  %v816_v41 = vadd.f32 %v815_v23, %v785_v22  ;;  %v414_v42 = vadd.f32 %v1696_v17, %v413_v29 }
 0x167   : > { %525 = vst [vmem:[%s1720_s13 + $0x68] sm:$0xff] %v419_v54  ;;  %v720_v45 = vmul.f32 %v1771_v3, %v419_v54  ;;  %v1874_v55 = vadd.f32 %v1696_v17, %v493_v63  ;;  %v567_v3 = vadd.s32 168, %v1666_v57  ;;  %541 = vst [vmem:[%s1720_s13 + $0xe8] sm:$0xff] %v1870_v46  ;;  %vm631_vm4 = vcmp.lt.s32.totalorder %v599_v2, 512 }
 0x168   : > { %v817_v49 = vadd.f32 %v816_v41, %v786_v37  ;;  %524 = vst [vmem:[%s1720_s13 + $0x60] sm:$0xff] %v414_v42  ;;  %v719_v51 = vmul.f32 %v1001_v61, %v414_v42  ;;  %v749_v39 = vadd.f32 %v748_v34, %v718_v18  ;;  %v1134_v52 = vpop.f32.mrb[14].mxu0  ;;  %v1158_v58 = vpop.f32.mrb[14].mxu1  ;;  %v1006_v18 = vsel %vm628_vm1, 1.0, %v1441_v15 }
 0x169   : > { %v429_v60 = vadd.f32 %v1134_v52, %v1696_v17  ;;  %v423_v1 = vpop.f32.mrb[15].mxu0  ;;  %v503_v61 = vpop.f32.mrb[15].mxu1  ;;  %540 = vst [vmem:[%s1720_s13 + $0xe0] sm:$0xff] %v1874_v55  ;;  %v789_v7 = vmul.f32 %v720_v45, %v419_v54  ;;  %v1888_v40 = vadd.f32 %v1158_v58, %v1696_v17  ;;  %v601_v35 = vadd.s32 %v1670_v59, %v568_v11 }
 0x16a   : > { %v750_v4 = vadd.f32 %v749_v39, %v719_v51  ;;  %v788_v5 = vmul.f32 %v719_v51, %v414_v42  ;;  %v818_v47 = vadd.f32 %v817_v49, %v787_v43  ;;  %v424_v6 = vadd.f32 %v1696_v17, %v423_v1 }
 0x16b   : > { %527 = vst [vmem:[%s1720_s13 + $0x78] sm:$0xff] %v429_v60  ;;  %v722_v8 = vmul.f32 %v1825_v62, %v429_v60  ;;  %v1893_v16 = vadd.f32 %v1696_v17, %v503_v61  ;;  %v600_v62 = vadd.s32 %v1670_v59, %v567_v3  ;;  %543 = vst [vmem:[%s1720_s13 + $0xf8] sm:$0xff] %v1888_v40  ;;  %v1007_v17 = vsel %vm629_vm2, 1.0, %v1441_v15 }
 0x16c   : > { %v819_v12 = vadd.f32 %v818_v47, %v788_v5  ;;  %526 = vst [vmem:[%s1720_s13 + $0x70] sm:$0xff] %v424_v6  ;;  %v721_v53 = vmul.f32 %v1838_v10, %v424_v6  ;;  %v751_v14 = vadd.f32 %v750_v4, %v720_v45  ;;  %v723_v10 = vmul.f32 %v1005_v30, %v1716_v36 }
 0x16d   : > { %542 = vst [vmem:[%s1720_s13 + $0xf0] sm:$0xff] %v1893_v16  ;;  %v570_v25 = vadd.s32 192, %v1666_v57  ;;  %v791_v27 = vmul.f32 %v722_v8, %v429_v60  ;;  %v724_v54 = vmul.f32 %v1006_v18, %v1709_v31  ;;  %v1008_v33 = vsel %vm630_vm3, 1.0, %v1441_v15 }
 0x16e   : > { %v752_v22 = vadd.f32 %v751_v14, %v721_v53  ;;  %v790_v23 = vmul.f32 %v721_v53, %v424_v6  ;;  %v820_v24 = vadd.f32 %v819_v12, %v789_v7  ;;  %vm632_vm5 = vcmp.lt.s32.totalorder %v600_v62, 512 }
 0x16f   : > { %v602_v30 = vadd.s32 %v1670_v59, %v569_v19  ;;  %v571_v63 = vadd.s32 200, %v1666_v57  ;;  %v792_v34 = vmul.f32 %v723_v10, %v1716_v36  ;;  %v725_v41 = vmul.f32 %v1007_v17, %v1761_v56 }
 0x170   : > { %v821_v28 = vadd.f32 %v820_v24, %v790_v23  ;;  %v753_v29 = vadd.f32 %v752_v22, %v722_v8  ;;  %v1009_v42 = vsel %vm631_vm4, 1.0, %v1441_v15  ;;  %vm633_vm6 = vcmp.lt.s32.totalorder %v601_v35, 512 }
 0x171   : > { %v603_v43 = vadd.s32 %v1670_v59, %v570_v25  ;;  %v572_v45 = vadd.s32 208, %v1666_v57  ;;  %v793_v38 = vmul.f32 %v724_v54, %v1709_v31  ;;  %v726_v51 = vmul.f32 %v1008_v33, %v1745_v48 }
 0x172   : > { %v754_v32 = vadd.f32 %v753_v29, %v723_v10  ;;  %v822_v37 = vadd.f32 %v821_v28, %v791_v27  ;;  %v1010_v52 = vsel %vm632_vm5, 1.0, %v1441_v15  ;;  %vm634_vm7 = vcmp.lt.s32.totalorder %v602_v30, 512 }
 0x173   : > { %v604_v36 = vadd.s32 %v1670_v59, %v571_v63  ;;  %v573_v58 = vadd.s32 216, %v1666_v57  ;;  %v794_v1 = vmul.f32 %v725_v41, %v1761_v56  ;;  %v727_v2 = vmul.f32 %v1009_v42, %v1785_v13 }
 0x174   : > { %v823_v49 = vadd.f32 %v822_v37, %v792_v34  ;;  %v755_v39 = vadd.f32 %v754_v32, %v724_v54  ;;  %v1011_v61 = vsel %vm633_vm6, 1.0, %v1441_v15  ;;  %vm635_vm8 = vcmp.lt.s32.totalorder %v603_v43, 512 }
 0x175   : > { %v605_v31 = vadd.s32 %v1670_v59, %v572_v45  ;;  %v574_v4 = vadd.s32 224, %v1666_v57  ;;  %v795_v5 = vmul.f32 %v726_v51, %v1745_v48  ;;  %v728_v6 = vmul.f32 %v1010_v52, %v1779_v9 }
 0x176   : > { %v756_v60 = vadd.f32 %v755_v39, %v725_v41  ;;  %v824_v3 = vadd.f32 %v823_v49, %v793_v38  ;;  %v1012_v8 = vsel %vm634_vm7, 1.0, %v1441_v15  ;;  %vm636_vm9 = vcmp.lt.s32.totalorder %v604_v36, 512 }
 0x177   : > { %v606_v56 = vadd.s32 %v1670_v59, %v573_v58  ;;  %v575_v11 = vadd.s32 232, %v1666_v57  ;;  %v796_v53 = vmul.f32 %v727_v2, %v1785_v13  ;;  %v729_v18 = vmul.f32 %v1011_v61, %v1809_v44 }
 0x178   : > { %v825_v47 = vadd.f32 %v824_v3, %v794_v1  ;;  %v757_v7 = vadd.f32 %v756_v60, %v726_v51  ;;  %v1013_v62 = vsel %vm635_vm8, 1.0, %v1441_v15  ;;  %vm637_vm10 = vcmp.lt.s32.totalorder %v605_v31, 512 }
 0x179   : > { %v607_v48 = vadd.s32 %v1670_v59, %v574_v4  ;;  %v576_v19 = vadd.s32 240, %v1666_v57  ;;  %v797_v22 = vmul.f32 %v728_v6, %v1779_v9  ;;  %v730_v24 = vmul.f32 %v1012_v8, %v1796_v26 }
 0x17a   : > { %v758_v12 = vadd.f32 %v757_v7, %v727_v2  ;;  %v826_v14 = vadd.f32 %v825_v47, %v795_v5  ;;  %v1014_v17 = vsel %vm636_vm9, 1.0, %v1441_v15  ;;  %vm638_vm11 = vcmp.lt.s32.totalorder %v606_v56, 512 }
 0x17b   : > { %v608_v13 = vadd.s32 %v1670_v59, %v575_v11  ;;  %v577_v35 = vadd.s32 248, %v1666_v57  ;;  %v798_v27 = vmul.f32 %v729_v18, %v1809_v44  ;;  %v731_v54 = vmul.f32 %v1013_v62, %v1830_v0 }
 0x17c   : > { %v827_v23 = vadd.f32 %v826_v14, %v796_v53  ;;  %v759_v10 = vadd.f32 %v758_v12, %v728_v6  ;;  %v1015_v29 = vsel %vm637_vm10, 1.0, %v1441_v15  ;;  %vm639_vm12 = vcmp.lt.s32.totalorder %v607_v48, 512 }
 0x17d   : > { %v609_v9 = vadd.s32 %v1670_v59, %v576_v19  ;;  %v799_v33 = vmul.f32 %v730_v24, %v1796_v26  ;;  %v732_v63 = vmul.f32 %v1014_v17, %v1814_v50  ;;  %v1016_v34 = vsel %vm638_vm11, 1.0, %v1441_v15 }
 0x17e   : > { %v760_v25 = vadd.f32 %v759_v10, %v729_v18  ;;  %v828_v28 = vadd.f32 %v827_v23, %v797_v22  ;;  %vm640_vm13 = vcmp.lt.s32.totalorder %v608_v13, 512  ;;  %v610_v57 = vadd.s32 %v1670_v59, %v577_v35 }
 0x17f   : > { %v800_v37 = vmul.f32 %v731_v54, %v1830_v0  ;;  %v733_v42 = vmul.f32 %v1015_v29, %v1852_v21  ;;  %v1017_v43 = vsel %vm639_vm12, 1.0, %v1441_v15  ;;  %vm641_vm14 = vcmp.lt.s32.totalorder %v609_v9, 512 }
 0x180   : > { %v829_v30 = vadd.f32 %v828_v28, %v798_v27  ;;  %v761_v32 = vadd.f32 %v760_v25, %v730_v24  ;;  %v801_v26 = vmul.f32 %v732_v63, %v1814_v50  ;;  %v734_v38 = vmul.f32 %v1016_v34, %v1849_v20 }
 0x181   : > { %v1018_v51 = vsel %vm640_vm13, 1.0, %v1441_v15  ;;  %vm642_vm15 = vcmp.lt.s32.totalorder %v610_v57, 512  ;;  %v802_v59 = vmul.f32 %v733_v42, %v1852_v21  ;;  %v735_v0 = vmul.f32 %v1017_v43, %v1874_v55 }
 0x182   : > { %v762_v44 = vadd.f32 %v761_v32, %v731_v54  ;;  %v830_v41 = vadd.f32 %v829_v30, %v799_v33  ;;  %v1019_v36 = vsel %vm641_vm14, 1.0, %v1441_v15  ;;  %v803_v58 = vmul.f32 %v734_v38, %v1849_v20 }
 0x183   : > { %v736_v50 = vmul.f32 %v1018_v51, %v1870_v46  ;;  %v1020_v3 = vsel %vm642_vm15, 1.0, %v1441_v15  ;;  %v804_v61 = vmul.f32 %v735_v0, %v1874_v55  ;;  %v737_v4 = vmul.f32 %v1019_v36, %v1893_v16 }
 0x184   : > { %v831_v45 = vadd.f32 %v830_v41, %v800_v37  ;;  %v763_v49 = vadd.f32 %v762_v44, %v732_v63  ;;  %v738_v47 = vmul.f32 %v1020_v3, %v1888_v40  ;;  %vm845_vm0 = vcmask 1040384  }
 0x185   : > { %v805_v21 = vmul.f32 %v736_v50, %v1870_v46  ;;  %v806_v20 = vmul.f32 %v737_v4, %v1893_v16  ;;  %vm847_vm1 = vcmask 1041408  }
 0x186   : > { %v764_v39 = vadd.f32 %v763_v49, %v733_v42  ;;  %v832_v52 = vadd.f32 %v831_v45, %v801_v26  ;;  %v807_v56 = vmul.f32 %v738_v47, %v1888_v40  ;;  %v1442_v40 = vmov (!%p2064_p4), 0.0  }
 0x187   : > { %853 = vst [vmem:[#allocation8] sm:$0xff] (!%p2064_p4), %v1442_v40 }
 0x188   : > { %v833_v60 = vadd.f32 %v832_v52, %v802_v59  ;;  %v765_v1 = vadd.f32 %v764_v39, %v734_v38 }
 0x18a   : > { %v766_v2 = vadd.f32 %v765_v1, %v735_v0  ;;  %v834_v31 = vadd.f32 %v833_v60, %v803_v58 }
 0x18c   : > { %v835_v5 = vadd.f32 %v834_v31, %v804_v61  ;;  %v767_v6 = vadd.f32 %v766_v2, %v736_v50 }
 0x18e   : > { %v768_v7 = vadd.f32 %v767_v6, %v737_v4  ;;  %v836_v8 = vadd.f32 %v835_v5, %v805_v21 }
 0x190   : > { %v769_v11 = vadd.f32 %v768_v7, %v738_v47  ;;  %v837_v15 = vadd.f32 %v836_v8, %v806_v20 }
 0x192   : > { %v770_v12 = vrot.slane %v769_v11, 4  ;;  %v838_v53 = vadd.f32 %v837_v15, %v807_v56 }
 0x194   : > { %v771_v55 = vadd.f32 %v770_v12, %v769_v11  ;;  %v839_v14 = vrot.slane %v838_v53, 4 }
 0x196   : > { %v772_v18 = vrot.slane %v771_v55, 2  ;;  %v840_v62 = vadd.f32 %v839_v14, %v838_v53 }
 0x198   : > { %v773_v48 = vadd.f32 %v772_v18, %v771_v55  ;;  %v841_v46 = vrot.slane %v840_v62, 2 }
 0x19a   : > { %v774_v19 = vrot.slane %v773_v48, 1  ;;  %v842_v22 = vadd.f32 %v841_v46, %v840_v62 }
 0x19b   : > { %852 = sbr.rel (%p2064_p4) target bundleno = 418 (0x1a2), region = 44 }
 0x19c   : > { %v843_v23 = vrot.slane %v842_v22, 1  ;;  %v775_v24 = vadd.f32 %v774_v19, %v773_v48 }
 0x19e   : > { %v844_v10 = vadd.f32 %v843_v23, %v842_v22 }
 0x1a0   : > { %v846_v16 = vsel %vm845_vm0, %v775_v24, %v844_v10 }
 0x1a1   : > { %v848_v17 = vsel %vm847_vm1, %v846_v16, 0.0 }
 0x1a2 PF: > { %v854_v13 = vld [vmem:[#allocation8] sm:$0xff]  ;;  %s1030_s9 = sshll.u32 %s1493_s19, 12  ;;  %s871_s7 = sshll.u32 %s1720_s13, 4  ;;  %s1979_s7 = int_to_ptr.vmem [resolvable:$true] %s871_s7 }
 0x1a3   : > { %v855_v35 = vadd.f32 %v854_v13, %v848_v17  ;;  %s1976_s6 = scalar_lea.hbm %s2048_s3, %s1030_s9  ;;  %s858_s26 = scalar_lea.sflag [#allocation4], %s1618_s11 }
 0x1a4   : > { %s1335_s8 = scalar_lea.vmem %s1979_s7, 4096  ;;  %s1443_s25 = smov [#allocation7]  }
 0x1a5   : > { %856 = vst [vmem:[#allocation8] sm:$0xff] %v855_v35  ;;  %p1336_p6 = scmp.ne.s32.totalorder %s1979_s7, %s1335_s8  ;;  %s1339_s14 = sshll.u32 %s1443_s25, 4  ;;  %s1340_s14 = int_to_ptr.vmem [resolvable:$false] %s1339_s14 }
 0x1a6   : > { %s1341_s20 = scalar_lea.vmem %s1340_s14, 8192  ;;  %p1342_p13 = scmp.lt.s32.totalorder %s1979_s7, %s1340_s14 }
 0x1a7   : > { %p1337_p8 = pnand %p1336_p6, %p1567_p11  ;;  %p1343_p3 = scmp.lt.s32.totalorder %s1341_s20, %s1335_s8 }
 0x1a9   : > { %p1338_p9 = pneg %p1337_p8  ;;  %p1344_p7 = por %p1343_p3, %p1342_p13 }
 0x1ab   : > { %p1345_p10 = pnand %p1344_p7, %p1338_p9 }
 0x1ad   : > { %1348 = shalt.err (!%p1345_p10)
}
 0x1ae   : > { %s1349_s5 = scalar_lea.hbm %s1976_s6, 4096  ;;  %s1353_s23 = scalar_lea.hbm %s2048_s3, 8192 }
 0x1af   : > { %p1350_p1 = scmp.ne.s32.totalorder %s1976_s6, %s1349_s5  ;;  %p1354_p12 = scmp.lt.u32.totalorder %s1976_s6, %s2048_s3 }
 0x1b0   : > { %p1355_p2 = scmp.lt.u32.totalorder %s1353_s23, %s1349_s5  ;;  %p1357_p6 = scmp.lt.u32.totalorder %s1349_s5, %s1976_s6 }
 0x1b1   : > { %p1351_p0 = pnand %p1350_p1, %p1567_p11 }
 0x1b2   : > { %p1356_p4 = por %p1355_p2, %p1354_p12 }
 0x1b3   : > { %p1352_p5 = pneg %p1351_p0 }
 0x1b4   : > { %p1358_p8 = por %p1357_p6, %p1356_p4 }
 0x1b6   : > { %p1359_p9 = pnand %p1358_p8, %p1352_p5 }
 0x1b8   : > { %1362 = shalt.err (!%p1359_p9)
}
 0x1b9   : > { %s1444_s9 = smov 128   ;;  %s1445_s28 = smov 8  }
 0x1ba   : > { %1213 = dma.vmem_to_hbm [thread:$0]  (%p1567_p11), %s1979_s7, 4096, %s1976_s6, %s858_s26, %s1444_s9, %s1444_s9, %s1445_s28  }
 0x1bb   : > { %s1446_s10 = smov [#allocation8]   ;;  %p2065_p3 = scmp.eq.s32.totalorder %s1493_s19, 1 }
 0x1bc   : > { %s885_s8 = sshll.u32 %s1446_s10, 4  ;;  %s886_s8 = int_to_ptr.vmem [resolvable:$true] %s885_s8 }
 0x1bd   : > { %s1363_s25 = scalar_lea.vmem %s886_s8, 128  ;;  %p1370_p1 = scmp.lt.s32.totalorder %s886_s8, %s886_s8 }
 0x1be   : > { %p1364_p13 = scmp.ne.s32.totalorder %s886_s8, %s1363_s25  ;;  %p1371_p0 = scmp.lt.s32.totalorder %s1363_s25, %s1363_s25 }
 0x1c0   : > { %p1365_p7 = pnand %p1364_p13, %p2065_p3  ;;  %p1372_p5 = por %p1371_p0, %p1370_p1 }
 0x1c2   : > { %p1366_p10 = pneg %p1365_p7 }
 0x1c4   : > { %p1373_p12 = pnand %p1372_p5, %p1366_p10 }
 0x1c6   : > { %1376 = shalt.err (!%p1373_p12)
}
 0x1c7   : > { %s1377_s30 = scalar_lea.hbm %s2049_s4, 128  ;;  %p2066_p2 = pmov %p2065_p3 }
 0x1c8   : > { %p1378_p11 = scmp.ne.s32.totalorder %s2049_s4, %s1377_s30  ;;  %p1383_p8 = scmp.lt.u32.totalorder %s1377_s30, %s2049_s4 }
 0x1ca   : > { %p1379_p4 = pnand %p1378_p11, %p2066_p2 }
 0x1cc   : > { %p1380_p6 = pneg %p1379_p4 }
 0x1ce   : > { %p1385_p9 = pnand %p1383_p8, %p1380_p6 }
 0x1d0   : > { %1388 = shalt.err (!%p1385_p9)
}
 0x1d1   : > { %p2067_p13 = pmov %p2066_p2  ;;  %p2068_p3 = pmov %p2066_p2 }
 0x1d3   : > { %1215 = dma.vmem_to_hbm [thread:$0]  (%p2067_p13), %s886_s8, 128, %s2049_s4, [#allocation9]  }
 0x1d4   : > { %1414 = dma.done.wait (%p2068_p3), [#allocation9], 128   ;;  %p2069_p7 = pmov %p2066_p2 }
 0x1d6   : > { %1416 = vsyncadd (%p2069_p7), [#allocation9], 4294967168 }
 0x1d7 PF: > { %s901_s21 = sand.u32 1, %s1423_s15   ;;  %p2070_p10 = scmp.ne.s32.totalorder %s2054_s22, 0 }
 0x1d8   : > { %p2071_p1 = scmp.ge.s32.totalorder %s1435_s18, 2  ;;  %s902_s23 = scalar_lea.sflag [#allocation4], %s901_s21 }
 0x1da   : > { %p1228_p0 = pnand %p2071_p1, %p2070_p10 }
 0x1dc   : > { %1418 = dma.done.wait (!%p1228_p0), %s902_s23, 4096  }
 0x1dd   : > { %1420 = vsyncadd (!%p1228_p0), %s902_s23, 4294963200  ;;  %p20_p5 = scmp.ge.s32.totalorder %s1529_s27, 4   ;;  %s2072_s15 = smov %s1427_s16 }
 0x1de   : > { %s2073_s16 = smov %s1431_s17  ;;  %s2074_s17 = smov %s1563_s24 }
 0x1df   : > { %s2075_s18 = smov %s1529_s27  ;;  %22 = sbr.rel (!%p20_p5) target bundleno = 7 (0x7), region = 93 }
 0x1e6   :  { %907 = vsyncpa [#allocation3], 1 }
 0x1e7   :  { %909 = vsyncpa [#allocation3 + $0x1], 1 }
 0x1e8   :  { %910 = vsyncpa [#allocation6], 1 }
 0x1e9   :  { %911 = vsyncpa [#allocation4], 1 }
 0x1ea   :  { %913 = vsyncpa [#allocation4 + $0x1], 1 }
 0x1eb   :  { %914 = vsyncpa [#allocation9], 1 }

</bundles_post_ra>
